<compile_context>
chip_gen: v6e
topology: v6e:2x2x1
jax: 0.10.0
libtpu: 0.0.40
codegen_flags: <defaults>
</compile_context>

<pallas_src>
import functools

import jax
import jax.numpy as jnp
from jax.experimental import pallas as pl
from jax.experimental.pallas import tpu as pltpu

_LANES = 128


def _round_up(x, m):
    return ((x + m - 1) // m) * m


# ---------------------------------------------------------------------------
# Kernel
# ---------------------------------------------------------------------------
def _res_conv1d_kernel(xm_ref, xh_ref, w1_ref, b1_ref, w2_ref, b2_ref, o_ref,
                       *, dilation: int, res_scale: float):
    # xm_ref : (1, C_in, TL)      main tile of the zero-padded NCL input
    # xh_ref : (1, C_in, HALO)    next HALO lanes of the same array (>= 2*d used)
    # w1_ref : (3, C_state, C_in) kernel-3 conv weights, one (C_state, C_in) per tap
    # b1_ref : (C_state, 1)
    # w2_ref : (C_in, C_state)    1x1 conv weights
    # b2_ref : (C_in, 1)
    # o_ref  : (1, C_in, TL)
    d = dilation
    tl = o_ref.shape[2]

    # Padded-input lanes [tile_start, tile_start + TL + HALO).  Both pieces are
    # whole 128-aligned lane blocks, so the concat is pure layout work.
    window = jnp.concatenate([xm_ref[0], xh_ref[0]], axis=1)      # (C_in, TL+HALO)
    total = window.shape[1]

    def tap(k):
        # window[:, k*d : k*d + TL], realized as an XLU lane rotate plus a
        # lane-aligned (free) slice instead of a misaligned slice copy.
        if k * d == 0:
            return window[:, :tl]
        return pltpu.roll(window, shift=total - k * d, axis=1)[:, :tl]

    s0 = tap(0)
    s1 = tap(1)          # centre tap == un-activated residual input
    s2 = tap(2)

    # Conv1 (kernel 3, dilated): three accumulated MXU matmuls, f32 accumulate.
    h = jnp.dot(w1_ref[0], jnp.maximum(s0, 0), preferred_element_type=jnp.float32)
    h = h + jnp.dot(w1_ref[1], jnp.maximum(s1, 0), preferred_element_type=jnp.float32)
    h = h + jnp.dot(w1_ref[2], jnp.maximum(s2, 0), preferred_element_type=jnp.float32)
    h = jnp.maximum(h + b1_ref[...].astype(jnp.float32), 0.0)    # second ReLU

    # Conv2 (1x1): (C_in, C_state) @ (C_state, TL), lane-dense output.
    y = jnp.dot(w2_ref[...], h.astype(w2_ref.dtype), preferred_element_type=jnp.float32)
    y = y + b2_ref[...].astype(jnp.float32)
    if res_scale != 1.0:
        y = y * jnp.float32(res_scale)

    # Residual add; the upcast of s1 fuses into the VPU add.
    o_ref[0] = (s1.astype(jnp.float32) + y).astype(o_ref.dtype)


# ---------------------------------------------------------------------------
# Planning
# ---------------------------------------------------------------------------
def _vmem_capacity_bytes():
    try:
        return int(pltpu.get_tpu_info().vmem_capacity_bytes)
    except Exception:
        return 64 * 1024 * 1024      # conservative (v7x-sized) fallback


def _plan_tiles(L, dilation, c_in, c_state, act_bytes, weight_bytes,
                vmem_limit, tile_l=None):
    """Pick the L tile: lane-aligned, MXU-friendly (>=256), VMEM-bounded."""
    halo = _round_up(max(2 * dilation, 1), _LANES)
    gran = halo * max(1, 256 // halo)            # matmul N dim >= 256 where possible
    # Per output column: double-buffered in/out blocks + window + tap/ReLU copies
    # in the activation dtype, plus f32 h / y / residual-add intermediates.
    per_col = act_bytes * c_in * 11 + 4 * c_state + 8 * c_in
    budget = vmem_limit - 2 * weight_bytes - (2 << 20)   # weights worst-case dbl-buffered
    budget = max(budget, per_col * gran)
    if tile_l is None:
        tile_l = budget // per_col
    tile_l = max(gran, min(int(tile_l), _round_up(L, gran)))
    tile_l = (tile_l // gran) * gran
    n_tiles = pl.cdiv(L, tile_l)
    return halo, tile_l, n_tiles, n_tiles * tile_l


# ---------------------------------------------------------------------------
# Wrapper
# ---------------------------------------------------------------------------
def res_conv1d_block(x_ncl, w1, b1, w2, b2, *, dilation=1, res_scale=1.0,
                     tile_l=None):
    """x_ncl: (N, C_in, L) like PyTorch.
    w1: (C_state, C_in, 3), b1: (C_state,), w2: (C_in, C_state, 1), b2: (C_in,).
    Returns (N, C_in, L)."""
    N, C_in, L = x_ncl.shape
    C_state = w1.shape[0]
    d = int(dilation)

    weight_bytes = ((3 * C_state * C_in + C_in * C_state) * w1.dtype.itemsize
                    + (C_state + C_in) * b1.dtype.itemsize)
    vmem_cap = _vmem_capacity_bytes()
    vmem_limit = (3 * vmem_cap) // 4             # ~96 MiB on v5e/v6e, ~48 MiB on v7x

    halo, TL, n_tiles, L_out = _plan_tiles(
        L, d, C_in, C_state, x_ncl.dtype.itemsize, weight_bytes, vmem_limit, tile_l)
    ratio = TL // halo

    # ---- host-side glue: a single zero-pad along L (no transposes needed) ----
    right_pad = L_out + halo - L - d             # halo >= 2*d and L_out >= L  =>  > 0
    xp = jnp.pad(x_ncl, ((0, 0), (0, 0), (d, right_pad)))       # (N, C_in, L_out+halo)

    w1_t = jnp.transpose(w1, (2, 0, 1))                         # (3, C_state, C_in)
    b1_t = b1.reshape(C_state, 1)
    w2_t = w2[:, :, 0]                                          # (C_in, C_state)
    b2_t = b2.reshape(C_in, 1)

    kernel = functools.partial(_res_conv1d_kernel, dilation=d,
                               res_scale=float(res_scale))

    cost = pl.CostEstimate(
        flops=2 * N * L_out * 4 * C_in * C_state,
        transcendentals=0,
        bytes_accessed=(N * C_in * (L_out + halo) + N * C_in * L_out)
        * x_ncl.dtype.itemsize + weight_bytes)

    def build(single_buffer_weights):
        def const_spec(shape):
            idx = lambda n, l: (0,) * len(shape)
            if single_buffer_weights:
                return pl.BlockSpec(shape, idx, pipeline_mode=pl.Buffered(1))
            return pl.BlockSpec(shape, idx)

        return pl.pallas_call(
            kernel,
            out_shape=jax.ShapeDtypeStruct((N, C_in, L_out), x_ncl.dtype),
            grid_spec=pltpu.PrefetchScalarGridSpec(
                num_scalar_prefetch=0,
                grid=(N, n_tiles),
                in_specs=[
                    pl.BlockSpec((1, C_in, TL), lambda n, l: (n, 0, l)),       # main tile
                    pl.BlockSpec((1, C_in, halo),
                                 lambda n, l: (n, 0, (l + 1) * ratio)),        # halo lanes
                    const_spec(w1_t.shape),                                    # w1
                    const_spec(b1_t.shape),                                    # b1
                    const_spec(w2_t.shape),                                    # w2
                    const_spec(b2_t.shape),                                    # b2
                ],
                out_specs=pl.BlockSpec((1, C_in, TL), lambda n, l: (n, 0, l)),
            ),
            compiler_params=pltpu.CompilerParams(
                dimension_semantics=("parallel", "parallel"),
                vmem_limit_bytes=vmem_limit),
            cost_estimate=cost,
        )

    args = (xp, xp, w1_t, b1_t, w2_t, b2_t)
    try:
        out_ncl = build(True)(*args)     # weights single-buffered (blocks never change)
    except Exception:
        # TODO(synk): pipeline_mode=pl.Buffered(1) rejected by this JAX build;
        # fall back to default double-buffered weight blocks.
        out_ncl = build(False)(*args)

    return out_ncl[:, :, :L]


# ---------------------------------------------------------------------------
# Pure-JAX reference (PyTorch-identical math)
# ---------------------------------------------------------------------------
def _reference(x_ncl, w1, b1, w2, b2, *, dilation=1, res_scale=1.0):
    N, C_in, L = x_ncl.shape
    d = dilation
    x_nlc = jnp.transpose(x_ncl, (0, 2, 1)).astype(jnp.float32)
    a = jnp.maximum(jnp.pad(x_nlc, ((0, 0), (d, d), (0, 0))), 0.0)
    w1_t = jnp.transpose(w1, (2, 1, 0)).astype(jnp.float32)          # (3, C_in, C_state)
    h = sum(jnp.einsum("nlc,cs->nls", a[:, k * d:k * d + L, :], w1_t[k])
            for k in range(3)) + b1.astype(jnp.float32)
    h = jnp.maximum(h, 0.0)
    y = jnp.einsum("nls,sc->nlc", h,
                   jnp.transpose(w2[:, :, 0], (1, 0)).astype(jnp.float32))
    y = y + b2.astype(jnp.float32)
    out = x_nlc + res_scale * y
    return jnp.transpose(out, (0, 2, 1)).astype(x_ncl.dtype)


if __name__ == "__main__":
    n_in, n_state = 4, 8

    key = jax.random.PRNGKey(0)
    k_x, k_w1, k_b1, k_w2, k_b2, k_x2 = jax.random.split(key, 6)
    w1 = jax.random.normal(k_w1, (n_state, n_in, 3), jnp.float32) * 0.2
    b1 = jax.random.normal(k_b1, (n_state,), jnp.float32) * 0.1
    w2 = jax.random.normal(k_w2, (n_in, n_state, 1), jnp.float32) * 0.2
    b2 = jax.random.normal(k_b2, (n_in,), jnp.float32) * 0.1

    # Config 1: module-sized shapes (batch=2, channels=4, length=16), dilation=1.
    x = jax.random.normal(k_x, (2, n_in, 16), jnp.float32)
    out = jax.block_until_ready(
        res_conv1d_block(x, w1, b1, w2, b2, dilation=1, res_scale=0.5))
    ref = _reference(x, w1, b1, w2, b2, dilation=1, res_scale=0.5)
    assert out.shape == x.shape and out.dtype == x.dtype
    assert jnp.allclose(out, ref, atol=1e-4, rtol=1e-4), "mismatch (dilation=1)"

    # Config 2: longer sequence with forced small L tiles -> exercises the
    # multi-tile halo path and the non-tile-aligned tail, dilation=2.
    x2 = jax.random.normal(k_x2, (2, n_in, 600), jnp.float32)
    out2 = jax.block_until_ready(
        res_conv1d_block(x2, w1, b1, w2, b2, dilation=2, res_scale=1.0, tile_l=256))
    ref2 = _reference(x2, w1, b1, w2, b2, dilation=2, res_scale=1.0)
    assert jnp.allclose(out2, ref2, atol=1e-4, rtol=1e-4), "mismatch (dilation=2)"

    print("KERNEL_OK")
</pallas_src>

<mosaic_0001>
module attributes {stable_mosaic.version = 11 : i64} {
  func.func @_res_conv1d_kernel(%arg0: i32, %arg1: i32, %arg2: memref<1x4x256xf32, #tpu.memory_space<vmem>>, %arg3: memref<1x4x128xf32, #tpu.memory_space<vmem>>, %arg4: memref<3x8x4xf32, #tpu.memory_space<vmem>>, %arg5: memref<8x1xf32, #tpu.memory_space<vmem>>, %arg6: memref<4x8xf32, #tpu.memory_space<vmem>>, %arg7: memref<4x1xf32, #tpu.memory_space<vmem>>, %arg8: memref<1x4x256xf32, #tpu.memory_space<vmem>>) attributes {dimension_semantics = [#tpu.dimension_semantics<parallel>, #tpu.dimension_semantics<parallel>], iteration_bounds = array<i64: 2, 1>, scalar_prefetch = 0 : i64, scratch_operands = 0 : i64, tpu.core_type = #tpu.core_type<tc>, window_params = [{transform_indices = @transform_0, window_bounds = array<i64: 1, 4, 256>}, {transform_indices = @transform_1, window_bounds = array<i64: 1, 4, 128>}, {pipeline_mode = #tpu.pipeline_mode<synchronous>, transform_indices = @transform_2, window_bounds = array<i64: 3, 8, 4>}, {pipeline_mode = #tpu.pipeline_mode<synchronous>, transform_indices = @transform_3, window_bounds = array<i64: 8, 1>}, {pipeline_mode = #tpu.pipeline_mode<synchronous>, transform_indices = @transform_4, window_bounds = array<i64: 4, 8>}, {pipeline_mode = #tpu.pipeline_mode<synchronous>, transform_indices = @transform_5, window_bounds = array<i64: 4, 1>}, {transform_indices = @transform_6, window_bounds = array<i64: 1, 4, 256>}]} {
    %c0 = arith.constant 0 : index
    %c0_0 = arith.constant 0 : index
    %c0_1 = arith.constant 0 : index
    %0 = vector.load %arg2[%c0, %c0_0, %c0_1] : memref<1x4x256xf32, #tpu.memory_space<vmem>>, vector<1x4x256xf32>
    %1 = vector.shape_cast %0 : vector<1x4x256xf32> to vector<4x256xf32>
    %c0_2 = arith.constant 0 : index
    %c0_3 = arith.constant 0 : index
    %c0_4 = arith.constant 0 : index
    %2 = vector.load %arg3[%c0_2, %c0_3, %c0_4] : memref<1x4x128xf32, #tpu.memory_space<vmem>>, vector<1x4x128xf32>
    %3 = vector.shape_cast %2 : vector<1x4x128xf32> to vector<4x128xf32>
    %4 = tpu.concatenate %1, %3 in 1 : vector<4x256xf32>, vector<4x128xf32> -> vector<4x384xf32>
    %5 = vector.extract_strided_slice %4 {offsets = [0, 0], sizes = [4, 256], strides = [1, 1]} : vector<4x384xf32> to vector<4x256xf32>
    %c383_i32 = arith.constant 383 : i32
    %6 = tpu.dynamic_rotate %4 by %c383_i32 dim 1 : vector<4x384xf32>, i32 -> vector<4x384xf32>
    %7 = vector.extract_strided_slice %6 {offsets = [0, 0], sizes = [4, 256], strides = [1, 1]} : vector<4x384xf32> to vector<4x256xf32>
    %c382_i32 = arith.constant 382 : i32
    %8 = tpu.dynamic_rotate %4 by %c382_i32 dim 1 : vector<4x384xf32>, i32 -> vector<4x384xf32>
    %9 = vector.extract_strided_slice %8 {offsets = [0, 0], sizes = [4, 256], strides = [1, 1]} : vector<4x384xf32> to vector<4x256xf32>
    %c0_5 = arith.constant 0 : index
    %c0_6 = arith.constant 0 : index
    %c0_7 = arith.constant 0 : index
    %10 = vector.load %arg4[%c0_5, %c0_6, %c0_7] : memref<3x8x4xf32, #tpu.memory_space<vmem>>, vector<1x8x4xf32>
    %11 = vector.shape_cast %10 : vector<1x8x4xf32> to vector<8x4xf32>
    %cst = arith.constant 0.000000e+00 : f32
    %12 = vector.broadcast %cst : f32 to vector<4x256xf32>
    %13 = arith.maximumf %5, %12 : vector<4x256xf32>
    %cst_8 = arith.constant dense<0.000000e+00> : vector<8x256xf32>
    %14 = tpu.matmul %11, %13, %cst_8 {dimension_numbers = #tpu.dot_dimension_numbers<[1], [0], [0], [1], [0, 0, 1, 1], [], []>} : vector<8x4xf32>, vector<4x256xf32>, vector<8x256xf32> -> vector<8x256xf32>
    %c1 = arith.constant 1 : index
    %c0_9 = arith.constant 0 : index
    %c0_10 = arith.constant 0 : index
    %15 = vector.load %arg4[%c1, %c0_9, %c0_10] : memref<3x8x4xf32, #tpu.memory_space<vmem>>, vector<1x8x4xf32>
    %16 = vector.shape_cast %15 : vector<1x8x4xf32> to vector<8x4xf32>
    %cst_11 = arith.constant 0.000000e+00 : f32
    %17 = vector.broadcast %cst_11 : f32 to vector<4x256xf32>
    %18 = arith.maximumf %7, %17 : vector<4x256xf32>
    %cst_12 = arith.constant dense<0.000000e+00> : vector<8x256xf32>
    %19 = tpu.matmul %16, %18, %cst_12 {dimension_numbers = #tpu.dot_dimension_numbers<[1], [0], [0], [1], [0, 0, 1, 1], [], []>} : vector<8x4xf32>, vector<4x256xf32>, vector<8x256xf32> -> vector<8x256xf32>
    %20 = arith.addf %14, %19 : vector<8x256xf32>
    %c2 = arith.constant 2 : index
    %c0_13 = arith.constant 0 : index
    %c0_14 = arith.constant 0 : index
    %21 = vector.load %arg4[%c2, %c0_13, %c0_14] : memref<3x8x4xf32, #tpu.memory_space<vmem>>, vector<1x8x4xf32>
    %22 = vector.shape_cast %21 : vector<1x8x4xf32> to vector<8x4xf32>
    %cst_15 = arith.constant 0.000000e+00 : f32
    %23 = vector.broadcast %cst_15 : f32 to vector<4x256xf32>
    %24 = arith.maximumf %9, %23 : vector<4x256xf32>
    %cst_16 = arith.constant dense<0.000000e+00> : vector<8x256xf32>
    %25 = tpu.matmul %22, %24, %cst_16 {dimension_numbers = #tpu.dot_dimension_numbers<[1], [0], [0], [1], [0, 0, 1, 1], [], []>} : vector<8x4xf32>, vector<4x256xf32>, vector<8x256xf32> -> vector<8x256xf32>
    %26 = arith.addf %20, %25 : vector<8x256xf32>
    %c0_17 = arith.constant 0 : index
    %c0_18 = arith.constant 0 : index
    %27 = vector.load %arg5[%c0_17, %c0_18] : memref<8x1xf32, #tpu.memory_space<vmem>>, vector<8x1xf32>
    %28 = vector.broadcast %27 : vector<8x1xf32> to vector<8x256xf32>
    %29 = arith.addf %26, %28 : vector<8x256xf32>
    %cst_19 = arith.constant 0.000000e+00 : f32
    %30 = vector.broadcast %cst_19 : f32 to vector<8x256xf32>
    %31 = arith.maximumf %29, %30 : vector<8x256xf32>
    %c0_20 = arith.constant 0 : index
    %c0_21 = arith.constant 0 : index
    %32 = vector.load %arg6[%c0_20, %c0_21] : memref<4x8xf32, #tpu.memory_space<vmem>>, vector<4x8xf32>
    %cst_22 = arith.constant dense<0.000000e+00> : vector<4x256xf32>
    %33 = tpu.matmul %32, %31, %cst_22 {dimension_numbers = #tpu.dot_dimension_numbers<[1], [0], [0], [1], [0, 0, 1, 1], [], []>} : vector<4x8xf32>, vector<8x256xf32>, vector<4x256xf32> -> vector<4x256xf32>
    %c0_23 = arith.constant 0 : index
    %c0_24 = arith.constant 0 : index
    %34 = vector.load %arg7[%c0_23, %c0_24] : memref<4x1xf32, #tpu.memory_space<vmem>>, vector<4x1xf32>
    %35 = vector.broadcast %34 : vector<4x1xf32> to vector<4x256xf32>
    %36 = arith.addf %33, %35 : vector<4x256xf32>
    %cst_25 = arith.constant 5.000000e-01 : f32
    %37 = vector.broadcast %cst_25 : f32 to vector<4x256xf32>
    %38 = arith.mulf %36, %37 : vector<4x256xf32>
    %39 = arith.addf %7, %38 : vector<4x256xf32>
    %c0_26 = arith.constant 0 : index
    %c0_27 = arith.constant 0 : index
    %c0_28 = arith.constant 0 : index
    %40 = vector.load %arg8[%c0_26, %c0_27, %c0_28] : memref<1x4x256xf32, #tpu.memory_space<vmem>>, vector<1x4x256xf32>
    %41 = vector.shape_cast %40 : vector<1x4x256xf32> to vector<4x256xf32>
    %42 = vector.shape_cast %39 : vector<4x256xf32> to vector<1x4x256xf32>
    tpu.vector_store %arg8[%c0_26, %c0_27, %c0_28], %42 {strides = array<i32>} : memref<1x4x256xf32, #tpu.memory_space<vmem>>, vector<1x4x256xf32>,
    return
  }
  func.func @transform_0(%arg0: i32, %arg1: i32) -> (i32, i32, i32) {
    %c0_i32 = arith.constant 0 : i32
    %c0_i32_0 = arith.constant 0 : i32
    return %arg0, %c0_i32, %arg1 : i32, i32, i32
  }
  func.func @transform_1(%arg0: i32, %arg1: i32) -> (i32, i32, i32) {
    %c1_i32 = arith.constant 1 : i32
    %0 = arith.addi %arg1, %c1_i32 : i32
    %c2_i32 = arith.constant 2 : i32
    %1 = arith.muli %0, %c2_i32 : i32
    %c0_i32 = arith.constant 0 : i32
    %c0_i32_0 = arith.constant 0 : i32
    return %arg0, %c0_i32, %1 : i32, i32, i32
  }
  func.func @transform_2(%arg0: i32, %arg1: i32) -> (i32, i32, i32) {
    %c0_i32 = arith.constant 0 : i32
    %c0_i32_0 = arith.constant 0 : i32
    %c0_i32_1 = arith.constant 0 : i32
    %c0_i32_2 = arith.constant 0 : i32
    return %c0_i32, %c0_i32_0, %c0_i32_1 : i32, i32, i32
  }
  func.func @transform_3(%arg0: i32, %arg1: i32) -> (i32, i32) {
    %c0_i32 = arith.constant 0 : i32
    %c0_i32_0 = arith.constant 0 : i32
    %c0_i32_1 = arith.constant 0 : i32
    return %c0_i32, %c0_i32_0 : i32, i32
  }
  func.func @transform_4(%arg0: i32, %arg1: i32) -> (i32, i32) {
    %c0_i32 = arith.constant 0 : i32
    %c0_i32_0 = arith.constant 0 : i32
    %c0_i32_1 = arith.constant 0 : i32
    return %c0_i32, %c0_i32_0 : i32, i32
  }
  func.func @transform_5(%arg0: i32, %arg1: i32) -> (i32, i32) {
    %c0_i32 = arith.constant 0 : i32
    %c0_i32_0 = arith.constant 0 : i32
    %c0_i32_1 = arith.constant 0 : i32
    return %c0_i32, %c0_i32_0 : i32, i32
  }
  func.func @transform_6(%arg0: i32, %arg1: i32) -> (i32, i32, i32) {
    %c0_i32 = arith.constant 0 : i32
    %c0_i32_0 = arith.constant 0 : i32
    return %arg0, %c0_i32, %arg1 : i32, i32, i32
  }
}

module attributes {stable_mosaic.version = 11 : i64} {
  func.func @_res_conv1d_kernel(%arg0: i32, %arg1: i32, %arg2: memref<1x4x256xf32, #tpu.memory_space<vmem>>, %arg3: memref<1x4x128xf32, #tpu.memory_space<vmem>>, %arg4: memref<3x8x4xf32, #tpu.memory_space<vmem>>, %arg5: memref<8x1xf32, #tpu.memory_space<vmem>>, %arg6: memref<4x8xf32, #tpu.memory_space<vmem>>, %arg7: memref<4x1xf32, #tpu.memory_space<vmem>>, %arg8: memref<1x4x256xf32, #tpu.memory_space<vmem>>) attributes {dimension_semantics = [#tpu.dimension_semantics<parallel>, #tpu.dimension_semantics<parallel>], iteration_bounds = array<i64: 2, 1>, scalar_prefetch = 0 : i64, scratch_operands = 0 : i64, tpu.core_type = #tpu.core_type<tc>, window_params = [{transform_indices = @transform_0, window_bounds = array<i64: 1, 4, 256>}, {transform_indices = @transform_1, window_bounds = array<i64: 1, 4, 128>}, {pipeline_mode = #tpu.pipeline_mode<synchronous>, transform_indices = @transform_2, window_bounds = array<i64: 3, 8, 4>}, {pipeline_mode = #tpu.pipeline_mode<synchronous>, transform_indices = @transform_3, window_bounds = array<i64: 8, 1>}, {pipeline_mode = #tpu.pipeline_mode<synchronous>, transform_indices = @transform_4, window_bounds = array<i64: 4, 8>}, {pipeline_mode = #tpu.pipeline_mode<synchronous>, transform_indices = @transform_5, window_bounds = array<i64: 4, 1>}, {transform_indices = @transform_6, window_bounds = array<i64: 1, 4, 256>}]} {
    %c0 = arith.constant 0 : index
    %c0_0 = arith.constant 0 : index
    %c0_1 = arith.constant 0 : index
    %0 = vector.load %arg2[%c0, %c0_0, %c0_1] : memref<1x4x256xf32, #tpu.memory_space<vmem>>, vector<1x4x256xf32>
    %1 = vector.shape_cast %0 : vector<1x4x256xf32> to vector<4x256xf32>
    %c0_2 = arith.constant 0 : index
    %c0_3 = arith.constant 0 : index
    %c0_4 = arith.constant 0 : index
    %2 = vector.load %arg3[%c0_2, %c0_3, %c0_4] : memref<1x4x128xf32, #tpu.memory_space<vmem>>, vector<1x4x128xf32>
    %3 = vector.shape_cast %2 : vector<1x4x128xf32> to vector<4x128xf32>
    %4 = tpu.concatenate %1, %3 in 1 : vector<4x256xf32>, vector<4x128xf32> -> vector<4x384xf32>
    %5 = vector.extract_strided_slice %4 {offsets = [0, 0], sizes = [4, 256], strides = [1, 1]} : vector<4x384xf32> to vector<4x256xf32>
    %c383_i32 = arith.constant 383 : i32
    %6 = tpu.dynamic_rotate %4 by %c383_i32 dim 1 : vector<4x384xf32>, i32 -> vector<4x384xf32>
    %7 = vector.extract_strided_slice %6 {offsets = [0, 0], sizes = [4, 256], strides = [1, 1]} : vector<4x384xf32> to vector<4x256xf32>
    %c382_i32 = arith.constant 382 : i32
    %8 = tpu.dynamic_rotate %4 by %c382_i32 dim 1 : vector<4x384xf32>, i32 -> vector<4x384xf32>
    %9 = vector.extract_strided_slice %8 {offsets = [0, 0], sizes = [4, 256], strides = [1, 1]} : vector<4x384xf32> to vector<4x256xf32>
    %c0_5 = arith.constant 0 : index
    %c0_6 = arith.constant 0 : index
    %c0_7 = arith.constant 0 : index
    %10 = vector.load %arg4[%c0_5, %c0_6, %c0_7] : memref<3x8x4xf32, #tpu.memory_space<vmem>>, vector<1x8x4xf32>
    %11 = vector.shape_cast %10 : vector<1x8x4xf32> to vector<8x4xf32>
    %cst = arith.constant 0.000000e+00 : f32
    %12 = vector.broadcast %cst : f32 to vector<4x256xf32>
    %13 = arith.maximumf %5, %12 : vector<4x256xf32>
    %cst_8 = arith.constant dense<0.000000e+00> : vector<8x256xf32>
    %14 = tpu.matmul %11, %13, %cst_8 {dimension_numbers = #tpu.dot_dimension_numbers<[1], [0], [0], [1], [0, 0, 1, 1], [], []>} : vector<8x4xf32>, vector<4x256xf32>, vector<8x256xf32> -> vector<8x256xf32>
    %c1 = arith.constant 1 : index
    %c0_9 = arith.constant 0 : index
    %c0_10 = arith.constant 0 : index
    %15 = vector.load %arg4[%c1, %c0_9, %c0_10] : memref<3x8x4xf32, #tpu.memory_space<vmem>>, vector<1x8x4xf32>
    %16 = vector.shape_cast %15 : vector<1x8x4xf32> to vector<8x4xf32>
    %cst_11 = arith.constant 0.000000e+00 : f32
    %17 = vector.broadcast %cst_11 : f32 to vector<4x256xf32>
    %18 = arith.maximumf %7, %17 : vector<4x256xf32>
    %cst_12 = arith.constant dense<0.000000e+00> : vector<8x256xf32>
    %19 = tpu.matmul %16, %18, %cst_12 {dimension_numbers = #tpu.dot_dimension_numbers<[1], [0], [0], [1], [0, 0, 1, 1], [], []>} : vector<8x4xf32>, vector<4x256xf32>, vector<8x256xf32> -> vector<8x256xf32>
    %20 = arith.addf %14, %19 : vector<8x256xf32>
    %c2 = arith.constant 2 : index
    %c0_13 = arith.constant 0 : index
    %c0_14 = arith.constant 0 : index
    %21 = vector.load %arg4[%c2, %c0_13, %c0_14] : memref<3x8x4xf32, #tpu.memory_space<vmem>>, vector<1x8x4xf32>
    %22 = vector.shape_cast %21 : vector<1x8x4xf32> to vector<8x4xf32>
    %cst_15 = arith.constant 0.000000e+00 : f32
    %23 = vector.broadcast %cst_15 : f32 to vector<4x256xf32>
    %24 = arith.maximumf %9, %23 : vector<4x256xf32>
    %cst_16 = arith.constant dense<0.000000e+00> : vector<8x256xf32>
    %25 = tpu.matmul %22, %24, %cst_16 {dimension_numbers = #tpu.dot_dimension_numbers<[1], [0], [0], [1], [0, 0, 1, 1], [], []>} : vector<8x4xf32>, vector<4x256xf32>, vector<8x256xf32> -> vector<8x256xf32>
    %26 = arith.addf %20, %25 : vector<8x256xf32>
    %c0_17 = arith.constant 0 : index
    %c0_18 = arith.constant 0 : index
    %27 = vector.load %arg5[%c0_17, %c0_18] : memref<8x1xf32, #tpu.memory_space<vmem>>, vector<8x1xf32>
    %28 = vector.broadcast %27 : vector<8x1xf32> to vector<8x256xf32>
    %29 = arith.addf %26, %28 : vector<8x256xf32>
    %cst_19 = arith.constant 0.000000e+00 : f32
    %30 = vector.broadcast %cst_19 : f32 to vector<8x256xf32>
    %31 = arith.maximumf %29, %30 : vector<8x256xf32>
    %c0_20 = arith.constant 0 : index
    %c0_21 = arith.constant 0 : index
    %32 = vector.load %arg6[%c0_20, %c0_21] : memref<4x8xf32, #tpu.memory_space<vmem>>, vector<4x8xf32>
    %cst_22 = arith.constant dense<0.000000e+00> : vector<4x256xf32>
    %33 = tpu.matmul %32, %31, %cst_22 {dimension_numbers = #tpu.dot_dimension_numbers<[1], [0], [0], [1], [0, 0, 1, 1], [], []>} : vector<4x8xf32>, vector<8x256xf32>, vector<4x256xf32> -> vector<4x256xf32>
    %c0_23 = arith.constant 0 : index
    %c0_24 = arith.constant 0 : index
    %34 = vector.load %arg7[%c0_23, %c0_24] : memref<4x1xf32, #tpu.memory_space<vmem>>, vector<4x1xf32>
    %35 = vector.broadcast %34 : vector<4x1xf32> to vector<4x256xf32>
    %36 = arith.addf %33, %35 : vector<4x256xf32>
    %cst_25 = arith.constant 5.000000e-01 : f32
    %37 = vector.broadcast %cst_25 : f32 to vector<4x256xf32>
    %38 = arith.mulf %36, %37 : vector<4x256xf32>
    %39 = arith.addf %7, %38 : vector<4x256xf32>
    %c0_26 = arith.constant 0 : index
    %c0_27 = arith.constant 0 : index
    %c0_28 = arith.constant 0 : index
    %40 = vector.load %arg8[%c0_26, %c0_27, %c0_28] : memref<1x4x256xf32, #tpu.memory_space<vmem>>, vector<1x4x256xf32>
    %41 = vector.shape_cast %40 : vector<1x4x256xf32> to vector<4x256xf32>
    %42 = vector.shape_cast %39 : vector<4x256xf32> to vector<1x4x256xf32>
    tpu.vector_store %arg8[%c0_26, %c0_27, %c0_28], %42 {strides = array<i32>} : memref<1x4x256xf32, #tpu.memory_space<vmem>>, vector<1x4x256xf32>,
    return
  }
  func.func @transform_0(%arg0: i32, %arg1: i32) -> (i32, i32, i32) {
    %c0_i32 = arith.constant 0 : i32
    %c0_i32_0 = arith.constant 0 : i32
    return %arg0, %c0_i32, %arg1 : i32, i32, i32
  }
  func.func @transform_1(%arg0: i32, %arg1: i32) -> (i32, i32, i32) {
    %c1_i32 = arith.constant 1 : i32
    %0 = arith.addi %arg1, %c1_i32 : i32
    %c2_i32 = arith.constant 2 : i32
    %1 = arith.muli %0, %c2_i32 : i32
    %c0_i32 = arith.constant 0 : i32
    %c0_i32_0 = arith.constant 0 : i32
    return %arg0, %c0_i32, %1 : i32, i32, i32
  }
  func.func @transform_2(%arg0: i32, %arg1: i32) -> (i32, i32, i32) {
    %c0_i32 = arith.constant 0 : i32
    %c0_i32_0 = arith.constant 0 : i32
    %c0_i32_1 = arith.constant 0 : i32
    %c0_i32_2 = arith.constant 0 : i32
    return %c0_i32, %c0_i32_0, %c0_i32_1 : i32, i32, i32
  }
  func.func @transform_3(%arg0: i32, %arg1: i32) -> (i32, i32) {
    %c0_i32 = arith.constant 0 : i32
    %c0_i32_0 = arith.constant 0 : i32
    %c0_i32_1 = arith.constant 0 : i32
    return %c0_i32, %c0_i32_0 : i32, i32
  }
  func.func @transform_4(%arg0: i32, %arg1: i32) -> (i32, i32) {
    %c0_i32 = arith.constant 0 : i32
    %c0_i32_0 = arith.constant 0 : i32
    %c0_i32_1 = arith.constant 0 : i32
    return %c0_i32, %c0_i32_0 : i32, i32
  }
  func.func @transform_5(%arg0: i32, %arg1: i32) -> (i32, i32) {
    %c0_i32 = arith.constant 0 : i32
    %c0_i32_0 = arith.constant 0 : i32
    %c0_i32_1 = arith.constant 0 : i32
    return %c0_i32, %c0_i32_0 : i32, i32
  }
  func.func @transform_6(%arg0: i32, %arg1: i32) -> (i32, i32, i32) {
    %c0_i32 = arith.constant 0 : i32
    %c0_i32_0 = arith.constant 0 : i32
    return %arg0, %c0_i32, %arg1 : i32, i32, i32
  }
}

</mosaic_0001>

<bundles_post_ra>
// kernel: tpu_custom_call.1
= control target key start
LH: loop header
LB: loop body
LE: loop exit
PB: predicated region body
PF: predicated region fallthrough
CT: control target
= control target key end

     0   :  { %11 = vsyncpa [#allocation3], 0  ;;  %s1178_s0 = inlined_call_operand.vmem [shape: f32[2,4,384], index: 0, kind: input, shape index: {}]   ;;  %s1179_s1 = inlined_call_operand.vmem [shape: f32[2,4,384], index: 1, kind: input, shape index: {}]   ;;  %s1180_s2 = inlined_call_operand.vmem [shape: f32[3,8,4], index: 2, kind: input, shape index: {}]   ;;  %s1181_s3 = inlined_call_operand.vmem [shape: f32[8,1], index: 3, kind: input, shape index: {}]   ;;  %s1182_s4 = inlined_call_operand.vmem [shape: f32[4,8], index: 4, kind: input, shape index: {}]   ;;  %s1183_s5 = inlined_call_operand.vmem [shape: f32[4,1], index: 5, kind: input, shape index: {}]   ;;  %s1184_s6 = inlined_call_operand.hbm [shape: f32[2,4,256], index: 6, kind: output, shape index: {}]  }
   0x1   :  { %13 = vsyncpa [#allocation3 + $0x1], 0  ;;  %s1049_s21 = smov 0   ;;  %s1051_s22 = smov 0  }
   0x2   :  { %s1053_s23 = smov 0   ;;  %s1055_s24 = smov 0  }
   0x3   :  { %s1057_s25 = smov 0   ;;  %s1059_s26 = smov 0  }
   0x4 LB: > { %s838_s27 = sadd.s32 4294967295, %s1007_s26   ;;  %s839_s28 = sadd.s32 4294967294, %s1007_s26   ;;  %s1007_s26 = sphi %s1059_s26, %s19_s26   ;;  %s1003_s25 = sphi %s1057_s25, %s1191_s25   ;;  %s999_s24 = sphi %s1055_s24, %s1190_s24   ;;  %s995_s23 = sphi %s1053_s23, %s1189_s23   ;;  %s991_s22 = sphi %s1051_s22, %s1188_s22   ;;  %s987_s21 = sphi %s1049_s21, %s1187_s21  }
   0x5   : > { %s31_s29 = sadd.s32 1, %s1003_s25  ;;  %s184_s30 = sadd.s32 1, %s995_s23 }
   0x6   : > { %p33_p0 = scmp.ge.s32.totalorder %s31_s29, 2  ;;  %p194_p1 = scmp.ne.s32.totalorder %s995_s23, %s991_s22 }
   0x7   : > { %p195_p2 = scmp.eq.s32.totalorder %s838_s27, 1  ;;  %p200_p3 = scmp.ne.s32.totalorder %s991_s22, %s987_s21 }
   0x8   : > { %s1193_s29 = smov (%p33_p0, %s31_s29), 0  ;;  %p201_p5 = scmp.eq.s32.totalorder %s839_s28, 1 }
   0x9   : > { %p1089_p4 = por %p195_p2, %p194_p1  ;;  %s179_s8 = ssub.s32 %s1003_s25, %s1193_s29 }
   0xa   : > { %p842_p6 = scmp.ge.s32.totalorder %s1007_s26, 1  ;;  %p182_p7 = scmp.eq.s32.totalorder %s179_s8, 0 }
   0xb   : > { %p1096_p8 = por %p201_p5, %p200_p3  ;;  %p267_p9 = scmp.lt.s32.totalorder %s1007_s26, 3 }
   0xc   : > { %s1102_s10 = scalar_select %p182_p7, %s995_s23, %s184_s30  }
   0xd   : > { %p268_p10 = pnand %p842_p6, %p267_p9 }
   0xe   : > { %p320_p11 = scmp.lt.s32.totalorder (!%p268_p10), %s999_s24, 1  ;;  %s1010_s20 = smov (!%p268_p10), 127  }
   0xf   : > { %271 = sbr.rel (%p268_p10) target bundleno = 574 (0x23e), region = 44  ;;  %s1012_s30 = smov (!%p268_p10), 126  }
  0x10   : > { %s865_s28 = sshll.u32 (!%p268_p10), %s999_s24, 7 }
  0x11   : > { %s742_s13 = scalar_lea.hbm (!%p268_p10), %s1184_s6, %s865_s28 }
  0x14   : > { %s321_s11 = scalar_select %p320_p11, %s999_s24, 1  ;;  %v1009_v0 = vmov 0.0   ;;  %vm382_vm0 = vcmask 1043456   ;;  %v1011_v6 = vmov 0   ;;  %vm378_vm1 = vcmask 31744   ;;  %v371_v7 = vld [vmem:[%s1180_s2] sm:$0xff] }
  0x15   : > { %453 = vmatprep.mubr.f32.mxu0 %v1009_v0  ;;  %533 = vmatprep.mubr.f32.mxu1 %v1009_v0  ;;  %v626_v8 = vld [vmem:[%s1181_s3] sm:$0xff]  ;;  %v357_v9 = vlaneseq  ;;  %v846_v20 = vld [vmem:[%s1180_s2 + $0x8] sm:$0xff]  ;;  %v853_v26 = vld [vmem:[%s1180_s2 + $0x10] sm:$0xff]  ;;  %vm643_vm4 = vcmask 64512  }
  0x16   : > { %s866_s12 = smul.u32 12, %s321_s11  ;;  %928 = vset.pattern.permute.xlu0 %v1011_v6  ;;  %929 = vset.pattern.permute.xlu1 %v1011_v6  ;;  %v637_v27 = vld [vmem:[%s1183_s5] sm:$0xf] }
  0x17   : > { %v358_v10 = vand.u32 127, %v357_v9  ;;  %v636_v43 = vld [vmem:[%s1182_s4] sm:$0xf] }
  0x18   : > { %s327_s15 = scalar_lea.vmem %s1178_s0, %s866_s12  ;;  %s864_s16 = sadd.s32 8, %s866_s12 }
  0x19   : > { %v346_v1 = vld [vmem:[%s327_s15] sm:$0xff]  ;;  %s342_s19 = scalar_lea.vmem %s1179_s1, %s864_s16  ;;  %vm359_vm2 = vcmp.lt.s32.totalorder %v358_v10, 127  ;;  %vm368_vm3 = vcmp.lt.s32.totalorder %v358_v10, 126  ;;  %s1013_s16 = smov [#allocation2]  }
  0x1a   : > { %351 = vrot.lane.b32.xlu1 %v346_v1, %s1010_s20  ;;  %v347_v2 = vld [vmem:[%s342_s19] sm:$0xf]  ;;  %v349_v3 = vcombine.high %v346_v1, %v346_v1  ;;  %v372_v4 = vmax.f32 %v346_v1, 0.0  ;;  %s935_s17 = sshll.u32 %s1013_s16, 4  ;;  %s936_s17 = int_to_ptr.vmem [resolvable:$false] %s935_s17 }
  0x1b   : > { %355 = vrot.lane.b32.xlu0 %v347_v2, %s1010_s20  ;;  %s937_s24 = scalar_lea.vmem %s936_s17, 256 }
  0x1c   : > { %v373_v5 = vmax.f32 %v349_v3, 0.0 }
  0x1e   : > { %364 = vrot.lane.b32.xlu1 %v349_v3, %s1012_s30  ;;  %850 = vmatprep.subr.msk.mxu1 %vm382_vm0, %v373_v5 }
  0x1f   : > { %353 = vrot.lane.b32.xlu0 %v349_v3, %s1010_s20  ;;  %851 = vmatpush1.msk.msra.mxu1 %vm382_vm0, %v372_v4  ;;  %s312_s20 = sand.u32 1, %s991_s22  }
  0x20   : > { %852 = vmatmul.mubr.msk.f32.vlgmr.msra.gmra.mxu1 %vm378_vm1, %v371_v7  ;;  %s843_s27 = sshll.u32 %s312_s20, 3  ;;  %s728_s14 = scalar_lea.sflag [#allocation3], %s312_s20 }
  0x21   : > { %711 = vmatprep.mubr.f32.mxu1 %v1009_v0 }
  0x22   : > { %362 = vrot.lane.b32.xlu1 %v346_v1, %s1012_s30 }
  0x23   : > { %366 = vrot.lane.b32.xlu0 %v347_v2, %s1012_s30  ;;  %s314_s30 = scalar_lea.vmem [#allocation2], %s843_s27 }
  0x24   : > { %s744_s8 = sshll.u32 %s314_s30, 4  ;;  %s745_s8 = int_to_ptr.vmem [resolvable:$true] %s744_s8 }
  0x25   : > { %s931_s15 = scalar_lea.vmem %s745_s8, 128  ;;  %p938_p1 = scmp.lt.s32.totalorder %s745_s8, %s936_s17 }
  0x26   : > { %640 = vperm.xlu1 %929, %v637_v27   ;;  %p932_p12 = scmp.ne.s32.totalorder %s745_s8, %s931_s15  ;;  %p939_p2 = scmp.lt.s32.totalorder %s937_s24, %s931_s15 }
  0x27   : > { %629 = vperm.xlu0 %928, %v626_v8  }
  0x28   : > { %p933_p13 = pnand %p932_p12, %p1089_p4  ;;  %p940_p3 = por %p939_p2, %p938_p1 }
  0x2a   : > { %p934_p0 = pneg %p933_p13 }
  0x2c   : > { %p941_p5 = pnand %p940_p3, %p934_p0 }
  0x8c   : > { %v352_v11 = vpop.permute.xlu1 %351 }
  0x8d   : > { %v356_v12 = vpop.permute.xlu0 %355 }
  0x90   : > { %v365_v13 = vpop.permute.xlu1 %364 }
  0x91   : > { %v354_v14 = vpop.permute.xlu0 %353 }
  0x92   : > { %v360_v15 = vsel %vm359_vm2, %v354_v14, %v356_v12  ;;  %v361_v16 = vsel %vm359_vm2, %v352_v11, %v354_v14 }
  0x93   : > { %v376_v17 = vmax.f32 %v361_v16, 0.0  ;;  %v377_v18 = vmax.f32 %v360_v15, 0.0 }
  0x94   : > { %v363_v19 = vpop.permute.xlu1 %362 }
  0x95   : > { %v370_v21 = vsel %vm368_vm3, %v363_v19, %v365_v13  ;;  %847 = vmatprep.subr.msk.mxu0 %vm382_vm0, %v377_v18  ;;  %v367_v22 = vpop.permute.xlu0 %366 }
  0x96   : > { %v369_v23 = vsel %vm368_vm3, %v365_v13, %v367_v22  ;;  %848 = vmatpush1.msk.msra.mxu0 %vm382_vm0, %v376_v17  ;;  %v542_v25 = vmax.f32 %v370_v21, 0.0 }
  0x97   : > { %v543_v24 = vmax.f32 %v369_v23, 0.0  ;;  %849 = vmatmul.mubr.msk.f32.vlgmr.msra.gmra.mxu0 %vm378_vm1, %v846_v20 }
  0x98   : > { %617 = vmatprep.mubr.f32.mxu0 %v1009_v0 }
  0x99   : > { %854 = vmatprep.subr.msk.mxu0 %vm382_vm0, %v543_v24 }
  0x9a   : > { %855 = vmatpush1.msk.msra.mxu0 %vm382_vm0, %v542_v25 }
  0x9b   : > { %856 = vmatmul.mubr.msk.f32.vlgmr.msra.gmra.mxu0 %vm378_vm1, %v853_v26 }
  0xa1   : > { %v641_v44 = vpop.permute.xlu1 %640 }
  0xa2   : > { %v630_v36 = vpop.permute.xlu0 %629 }
  0xe0   : > { %v535_v28 = vpop.f32.mrf.mxu1 }
  0xe2   : > { %v537_v31 = vpop.f32.mrf.mxu1 }
 0x157   : > { %v455_v29 = vpop.f32.mrf.mxu0 }
 0x158   : > { %v536_v32 = vadd.f32 %v535_v28, %v455_v29 }
 0x159   : > { %v457_v30 = vpop.f32.mrf.mxu0 }
 0x15a   : > { %v538_v34 = vadd.f32 %v537_v31, %v457_v30 }
 0x15b   : > { %v619_v33 = vpop.f32.mrf.mxu0 }
 0x15c   : > { %v624_v35 = vadd.f32 %v619_v33, %v536_v32 }
 0x15d   : > { %v621_v37 = vpop.f32.mrf.mxu0 }
 0x15e   : > { %v625_v38 = vadd.f32 %v621_v37, %v538_v34  ;;  %v632_v39 = vadd.f32 %v630_v36, %v624_v35 }
 0x160   : > { %v633_v40 = vadd.f32 %v630_v36, %v625_v38  ;;  %v634_v42 = vmax.f32 %v632_v39, 0.0 }
 0x162   : > { %v635_v41 = vmax.f32 %v633_v40, 0.0 }
 0x164   : > { %677 = vmatprep.subr.mxu1 %v635_v41 }
 0x165   : > { %678 = vmatpush1.msra.mxu1 %v634_v42 }
 0x166   : > { %857 = vmatmul.mubr.msk.f32.vlgmr.msra.gmra.mxu1 %vm643_vm4, %v636_v43 }
 0x226   : > { %v713_v45 = vpop.f32.mrf.mxu1 }
 0x227   : > { %v714_v46 = vadd.f32 %v713_v45, %v641_v44 }
 0x228   : > { %v715_v47 = vpop.f32.mrf.mxu1 }
 0x229   : > { %v718_v48 = vmul.f32 0.5, %v714_v46  ;;  %v716_v49 = vadd.f32 %v715_v47, %v641_v44 }
 0x22b   : > { %v719_v50 = vmul.f32 0.5, %v716_v49  ;;  %v720_v51 = vadd.f32 %v718_v48, %v361_v16 }
 0x22d   : > { %v721_v52 = vadd.f32 %v719_v50, %v360_v15 }
 0x22f   : > { %v724_v53 = vcombine.low %v720_v51, %v721_v52 }
 0x231   : > { %726 = vst [vmem:[%s314_s30] sm:$0xff] %v724_v53 }
 0x232   : > { %944 = shalt.err (!%p941_p5)
}
 0x233   : > { %s945_s18 = scalar_lea.hbm %s742_s13, 128  ;;  %s949_s27 = scalar_lea.hbm %s1184_s6, 256 }
 0x234   : > { %p946_p6 = scmp.ne.s32.totalorder %s742_s13, %s945_s18  ;;  %p950_p10 = scmp.lt.s32.totalorder %s742_s13, %s1184_s6 }
 0x235   : > { %p951_p11 = scmp.lt.s32.totalorder %s949_s27, %s945_s18 }
 0x236   : > { %p947_p7 = pnand %p946_p6, %p1089_p4 }
 0x237   : > { %p952_p12 = por %p951_p11, %p950_p10 }
 0x238   : > { %p948_p9 = pneg %p947_p7 }
 0x23a   : > { %p953_p13 = pnand %p952_p12, %p948_p9 }
 0x23c   : > { %956 = shalt.err (!%p953_p13)
}
 0x23d   : > { %868 = dma.vmem_to_hbm [thread:$0]  (%p1089_p4), %s745_s8, 128, %s742_s13, %s728_s14  }
 0x23e PF: > { %p875_p0 = scmp.ge.s32.totalorder %s1007_s26, 2  ;;  %s756_s11 = sand.u32 1, %s987_s21  }
 0x23f   : > { %s757_s12 = scalar_lea.sflag [#allocation3], %s756_s11 }
 0x240   : > { %p871_p1 = pnand %p875_p0, %p1096_p8 }
 0x242   : > { %p872_p2 = pneg %p871_p1 }
 0x244   : > { %982 = dma.done.wait (%p872_p2), %s757_s12, 128  }
 0x245   : > { %984 = vsyncadd (%p872_p2), %s757_s12, 4294967168  ;;  %s19_s26 = sadd.s32 1, %s1007_s26   ;;  %s1187_s21 = smov %s991_s22 }
 0x246   : > { %p16_p3 = scmp.ge.s32.totalorder %s19_s26, 4   ;;  %s1188_s22 = smov %s995_s23 }
 0x247   : > { %s1189_s23 = smov %s1102_s10  ;;  %s1190_s24 = smov %s1003_s25 }
 0x248   : > { %s1191_s25 = smov %s1193_s29  ;;  %18 = sbr.rel (!%p16_p3) target bundleno = 4 (0x4), region = 84 }
 0x24d   :  { %762 = vsyncpa [#allocation3], 1 }
 0x24e   :  { %764 = vsyncpa [#allocation3 + $0x1], 1 }

// kernel: tpu_custom_call.1
= control target key start
LH: loop header
LB: loop body
LE: loop exit
PB: predicated region body
PF: predicated region fallthrough
CT: control target
= control target key end

     0   :  { %11 = vsyncpa [#allocation3], 0  ;;  %s1178_s0 = inlined_call_operand.vmem [shape: f32[2,4,384], index: 0, kind: input, shape index: {}]   ;;  %s1179_s1 = inlined_call_operand.vmem [shape: f32[2,4,384], index: 1, kind: input, shape index: {}]   ;;  %s1180_s2 = inlined_call_operand.vmem [shape: f32[3,8,4], index: 2, kind: input, shape index: {}]   ;;  %s1181_s3 = inlined_call_operand.vmem [shape: f32[8,1], index: 3, kind: input, shape index: {}]   ;;  %s1182_s4 = inlined_call_operand.vmem [shape: f32[4,8], index: 4, kind: input, shape index: {}]   ;;  %s1183_s5 = inlined_call_operand.vmem [shape: f32[4,1], index: 5, kind: input, shape index: {}]   ;;  %s1184_s6 = inlined_call_operand.hbm [shape: f32[2,4,256], index: 6, kind: output, shape index: {}]  }
   0x1   :  { %13 = vsyncpa [#allocation3 + $0x1], 0  ;;  %s1049_s21 = smov 0   ;;  %s1051_s22 = smov 0  }
   0x2   :  { %s1053_s23 = smov 0   ;;  %s1055_s24 = smov 0  }
   0x3   :  { %s1057_s25 = smov 0   ;;  %s1059_s26 = smov 0  }
   0x4 LB: > { %s838_s27 = sadd.s32 4294967295, %s1007_s26   ;;  %s839_s28 = sadd.s32 4294967294, %s1007_s26   ;;  %s1007_s26 = sphi %s1059_s26, %s19_s26   ;;  %s1003_s25 = sphi %s1057_s25, %s1191_s25   ;;  %s999_s24 = sphi %s1055_s24, %s1190_s24   ;;  %s995_s23 = sphi %s1053_s23, %s1189_s23   ;;  %s991_s22 = sphi %s1051_s22, %s1188_s22   ;;  %s987_s21 = sphi %s1049_s21, %s1187_s21  }
   0x5   : > { %s31_s29 = sadd.s32 1, %s1003_s25  ;;  %s184_s30 = sadd.s32 1, %s995_s23 }
   0x6   : > { %p33_p0 = scmp.ge.s32.totalorder %s31_s29, 2  ;;  %p194_p1 = scmp.ne.s32.totalorder %s995_s23, %s991_s22 }
   0x7   : > { %p195_p2 = scmp.eq.s32.totalorder %s838_s27, 1  ;;  %p200_p3 = scmp.ne.s32.totalorder %s991_s22, %s987_s21 }
   0x8   : > { %s1193_s29 = smov (%p33_p0, %s31_s29), 0  ;;  %p201_p5 = scmp.eq.s32.totalorder %s839_s28, 1 }
   0x9   : > { %p1089_p4 = por %p195_p2, %p194_p1  ;;  %s179_s8 = ssub.s32 %s1003_s25, %s1193_s29 }
   0xa   : > { %p842_p6 = scmp.ge.s32.totalorder %s1007_s26, 1  ;;  %p182_p7 = scmp.eq.s32.totalorder %s179_s8, 0 }
   0xb   : > { %p1096_p8 = por %p201_p5, %p200_p3  ;;  %p267_p9 = scmp.lt.s32.totalorder %s1007_s26, 3 }
   0xc   : > { %s1102_s10 = scalar_select %p182_p7, %s995_s23, %s184_s30  }
   0xd   : > { %p268_p10 = pnand %p842_p6, %p267_p9 }
   0xe   : > { %p320_p11 = scmp.lt.s32.totalorder (!%p268_p10), %s999_s24, 1  ;;  %s1010_s20 = smov (!%p268_p10), 127  }
   0xf   : > { %271 = sbr.rel (%p268_p10) target bundleno = 574 (0x23e), region = 44  ;;  %s1012_s30 = smov (!%p268_p10), 126  }
  0x10   : > { %s865_s28 = sshll.u32 (!%p268_p10), %s999_s24, 7 }
  0x11   : > { %s742_s13 = scalar_lea.hbm (!%p268_p10), %s1184_s6, %s865_s28 }
  0x14   : > { %s321_s11 = scalar_select %p320_p11, %s999_s24, 1  ;;  %v1009_v0 = vmov 0.0   ;;  %vm382_vm0 = vcmask 1043456   ;;  %v1011_v6 = vmov 0   ;;  %vm378_vm1 = vcmask 31744   ;;  %v371_v7 = vld [vmem:[%s1180_s2] sm:$0xff] }
  0x15   : > { %453 = vmatprep.mubr.f32.mxu0 %v1009_v0  ;;  %533 = vmatprep.mubr.f32.mxu1 %v1009_v0  ;;  %v626_v8 = vld [vmem:[%s1181_s3] sm:$0xff]  ;;  %v357_v9 = vlaneseq  ;;  %v846_v20 = vld [vmem:[%s1180_s2 + $0x8] sm:$0xff]  ;;  %v853_v26 = vld [vmem:[%s1180_s2 + $0x10] sm:$0xff]  ;;  %vm643_vm4 = vcmask 64512  }
  0x16   : > { %s866_s12 = smul.u32 12, %s321_s11  ;;  %928 = vset.pattern.permute.xlu0 %v1011_v6  ;;  %929 = vset.pattern.permute.xlu1 %v1011_v6  ;;  %v637_v27 = vld [vmem:[%s1183_s5] sm:$0xf] }
  0x17   : > { %v358_v10 = vand.u32 127, %v357_v9  ;;  %v636_v43 = vld [vmem:[%s1182_s4] sm:$0xf] }
  0x18   : > { %s327_s15 = scalar_lea.vmem %s1178_s0, %s866_s12  ;;  %s864_s16 = sadd.s32 8, %s866_s12 }
  0x19   : > { %v346_v1 = vld [vmem:[%s327_s15] sm:$0xff]  ;;  %s342_s19 = scalar_lea.vmem %s1179_s1, %s864_s16  ;;  %vm359_vm2 = vcmp.lt.s32.totalorder %v358_v10, 127  ;;  %vm368_vm3 = vcmp.lt.s32.totalorder %v358_v10, 126  ;;  %s1013_s16 = smov [#allocation2]  }
  0x1a   : > { %351 = vrot.lane.b32.xlu1 %v346_v1, %s1010_s20  ;;  %v347_v2 = vld [vmem:[%s342_s19] sm:$0xf]  ;;  %v349_v3 = vcombine.high %v346_v1, %v346_v1  ;;  %v372_v4 = vmax.f32 %v346_v1, 0.0  ;;  %s935_s17 = sshll.u32 %s1013_s16, 4  ;;  %s936_s17 = int_to_ptr.vmem [resolvable:$false] %s935_s17 }
  0x1b   : > { %355 = vrot.lane.b32.xlu0 %v347_v2, %s1010_s20  ;;  %s937_s24 = scalar_lea.vmem %s936_s17, 256 }
  0x1c   : > { %v373_v5 = vmax.f32 %v349_v3, 0.0 }
  0x1e   : > { %364 = vrot.lane.b32.xlu1 %v349_v3, %s1012_s30  ;;  %850 = vmatprep.subr.msk.mxu1 %vm382_vm0, %v373_v5 }
  0x1f   : > { %353 = vrot.lane.b32.xlu0 %v349_v3, %s1010_s20  ;;  %851 = vmatpush1.msk.msra.mxu1 %vm382_vm0, %v372_v4  ;;  %s312_s20 = sand.u32 1, %s991_s22  }
  0x20   : > { %852 = vmatmul.mubr.msk.f32.vlgmr.msra.gmra.mxu1 %vm378_vm1, %v371_v7  ;;  %s843_s27 = sshll.u32 %s312_s20, 3  ;;  %s728_s14 = scalar_lea.sflag [#allocation3], %s312_s20 }
  0x21   : > { %711 = vmatprep.mubr.f32.mxu1 %v1009_v0 }
  0x22   : > { %362 = vrot.lane.b32.xlu1 %v346_v1, %s1012_s30 }
  0x23   : > { %366 = vrot.lane.b32.xlu0 %v347_v2, %s1012_s30  ;;  %s314_s30 = scalar_lea.vmem [#allocation2], %s843_s27 }
  0x24   : > { %s744_s8 = sshll.u32 %s314_s30, 4  ;;  %s745_s8 = int_to_ptr.vmem [resolvable:$true] %s744_s8 }
  0x25   : > { %s931_s15 = scalar_lea.vmem %s745_s8, 128  ;;  %p938_p1 = scmp.lt.s32.totalorder %s745_s8, %s936_s17 }
  0x26   : > { %640 = vperm.xlu1 %929, %v637_v27   ;;  %p932_p12 = scmp.ne.s32.totalorder %s745_s8, %s931_s15  ;;  %p939_p2 = scmp.lt.s32.totalorder %s937_s24, %s931_s15 }
  0x27   : > { %629 = vperm.xlu0 %928, %v626_v8  }
  0x28   : > { %p933_p13 = pnand %p932_p12, %p1089_p4  ;;  %p940_p3 = por %p939_p2, %p938_p1 }
  0x2a   : > { %p934_p0 = pneg %p933_p13 }
  0x2c   : > { %p941_p5 = pnand %p940_p3, %p934_p0 }
  0x8c   : > { %v352_v11 = vpop.permute.xlu1 %351 }
  0x8d   : > { %v356_v12 = vpop.permute.xlu0 %355 }
  0x90   : > { %v365_v13 = vpop.permute.xlu1 %364 }
  0x91   : > { %v354_v14 = vpop.permute.xlu0 %353 }
  0x92   : > { %v360_v15 = vsel %vm359_vm2, %v354_v14, %v356_v12  ;;  %v361_v16 = vsel %vm359_vm2, %v352_v11, %v354_v14 }
  0x93   : > { %v376_v17 = vmax.f32 %v361_v16, 0.0  ;;  %v377_v18 = vmax.f32 %v360_v15, 0.0 }
  0x94   : > { %v363_v19 = vpop.permute.xlu1 %362 }
  0x95   : > { %v370_v21 = vsel %vm368_vm3, %v363_v19, %v365_v13  ;;  %847 = vmatprep.subr.msk.mxu0 %vm382_vm0, %v377_v18  ;;  %v367_v22 = vpop.permute.xlu0 %366 }
  0x96   : > { %v369_v23 = vsel %vm368_vm3, %v365_v13, %v367_v22  ;;  %848 = vmatpush1.msk.msra.mxu0 %vm382_vm0, %v376_v17  ;;  %v542_v25 = vmax.f32 %v370_v21, 0.0 }
  0x97   : > { %v543_v24 = vmax.f32 %v369_v23, 0.0  ;;  %849 = vmatmul.mubr.msk.f32.vlgmr.msra.gmra.mxu0 %vm378_vm1, %v846_v20 }
  0x98   : > { %617 = vmatprep.mubr.f32.mxu0 %v1009_v0 }
  0x99   : > { %854 = vmatprep.subr.msk.mxu0 %vm382_vm0, %v543_v24 }
  0x9a   : > { %855 = vmatpush1.msk.msra.mxu0 %vm382_vm0, %v542_v25 }
  0x9b   : > { %856 = vmatmul.mubr.msk.f32.vlgmr.msra.gmra.mxu0 %vm378_vm1, %v853_v26 }
  0xa1   : > { %v641_v44 = vpop.permute.xlu1 %640 }
  0xa2   : > { %v630_v36 = vpop.permute.xlu0 %629 }
  0xe0   : > { %v535_v28 = vpop.f32.mrf.mxu1 }
  0xe2   : > { %v537_v31 = vpop.f32.mrf.mxu1 }
 0x157   : > { %v455_v29 = vpop.f32.mrf.mxu0 }
 0x158   : > { %v536_v32 = vadd.f32 %v535_v28, %v455_v29 }
 0x159   : > { %v457_v30 = vpop.f32.mrf.mxu0 }
 0x15a   : > { %v538_v34 = vadd.f32 %v537_v31, %v457_v30 }
 0x15b   : > { %v619_v33 = vpop.f32.mrf.mxu0 }
 0x15c   : > { %v624_v35 = vadd.f32 %v619_v33, %v536_v32 }
 0x15d   : > { %v621_v37 = vpop.f32.mrf.mxu0 }
 0x15e   : > { %v625_v38 = vadd.f32 %v621_v37, %v538_v34  ;;  %v632_v39 = vadd.f32 %v630_v36, %v624_v35 }
 0x160   : > { %v633_v40 = vadd.f32 %v630_v36, %v625_v38  ;;  %v634_v42 = vmax.f32 %v632_v39, 0.0 }
 0x162   : > { %v635_v41 = vmax.f32 %v633_v40, 0.0 }
 0x164   : > { %677 = vmatprep.subr.mxu1 %v635_v41 }
 0x165   : > { %678 = vmatpush1.msra.mxu1 %v634_v42 }
 0x166   : > { %857 = vmatmul.mubr.msk.f32.vlgmr.msra.gmra.mxu1 %vm643_vm4, %v636_v43 }
 0x226   : > { %v713_v45 = vpop.f32.mrf.mxu1 }
 0x227   : > { %v714_v46 = vadd.f32 %v713_v45, %v641_v44 }
 0x228   : > { %v715_v47 = vpop.f32.mrf.mxu1 }
 0x229   : > { %v718_v48 = vmul.f32 0.5, %v714_v46  ;;  %v716_v49 = vadd.f32 %v715_v47, %v641_v44 }
 0x22b   : > { %v719_v50 = vmul.f32 0.5, %v716_v49  ;;  %v720_v51 = vadd.f32 %v718_v48, %v361_v16 }
 0x22d   : > { %v721_v52 = vadd.f32 %v719_v50, %v360_v15 }
 0x22f   : > { %v724_v53 = vcombine.low %v720_v51, %v721_v52 }
 0x231   : > { %726 = vst [vmem:[%s314_s30] sm:$0xff] %v724_v53 }
 0x232   : > { %944 = shalt.err (!%p941_p5)
}
 0x233   : > { %s945_s18 = scalar_lea.hbm %s742_s13, 128  ;;  %s949_s27 = scalar_lea.hbm %s1184_s6, 256 }
 0x234   : > { %p946_p6 = scmp.ne.s32.totalorder %s742_s13, %s945_s18  ;;  %p950_p10 = scmp.lt.s32.totalorder %s742_s13, %s1184_s6 }
 0x235   : > { %p951_p11 = scmp.lt.s32.totalorder %s949_s27, %s945_s18 }
 0x236   : > { %p947_p7 = pnand %p946_p6, %p1089_p4 }
 0x237   : > { %p952_p12 = por %p951_p11, %p950_p10 }
 0x238   : > { %p948_p9 = pneg %p947_p7 }
 0x23a   : > { %p953_p13 = pnand %p952_p12, %p948_p9 }
 0x23c   : > { %956 = shalt.err (!%p953_p13)
}
 0x23d   : > { %868 = dma.vmem_to_hbm [thread:$0]  (%p1089_p4), %s745_s8, 128, %s742_s13, %s728_s14  }
 0x23e PF: > { %p875_p0 = scmp.ge.s32.totalorder %s1007_s26, 2  ;;  %s756_s11 = sand.u32 1, %s987_s21  }
 0x23f   : > { %s757_s12 = scalar_lea.sflag [#allocation3], %s756_s11 }
 0x240   : > { %p871_p1 = pnand %p875_p0, %p1096_p8 }
 0x242   : > { %p872_p2 = pneg %p871_p1 }
 0x244   : > { %982 = dma.done.wait (%p872_p2), %s757_s12, 128  }
 0x245   : > { %984 = vsyncadd (%p872_p2), %s757_s12, 4294967168  ;;  %s19_s26 = sadd.s32 1, %s1007_s26   ;;  %s1187_s21 = smov %s991_s22 }
 0x246   : > { %p16_p3 = scmp.ge.s32.totalorder %s19_s26, 4   ;;  %s1188_s22 = smov %s995_s23 }
 0x247   : > { %s1189_s23 = smov %s1102_s10  ;;  %s1190_s24 = smov %s1003_s25 }
 0x248   : > { %s1191_s25 = smov %s1193_s29  ;;  %18 = sbr.rel (!%p16_p3) target bundleno = 4 (0x4), region = 84 }
 0x24d   :  { %762 = vsyncpa [#allocation3], 1 }
 0x24e   :  { %764 = vsyncpa [#allocation3 + $0x1], 1 }

</bundles_post_ra>
